<compile_context>
chip_gen: v7x
topology: tpu7x:2x2x1
jax: 0.10.0
libtpu: 0.0.40
codegen_flags: <defaults>
</compile_context>

<pallas_src>
import functools
import math

import jax
import jax.numpy as jnp
from jax.experimental import pallas as pl
from jax.experimental.pallas import tpu as pltpu


# --------------------------------------------------------------------------------------
# Kernel A: LayerNorm + QKV projection -> head-contiguous (B, 3H, S, d)
# --------------------------------------------------------------------------------------
def _ln_qkv_kernel(x_ref, w_ref, g_ref, b_ref, qkv_ref, xn_ref, *, compute_dtype):
    c = pl.program_id(2)  # which of the 3*H per-head projection slices

    # LayerNorm once per (batch, seq-tile); the innermost "arbitrary" c axis reuses it.
    @pl.when(c == 0)
    def _():
        x = x_ref[0].astype(jnp.float32)                       # (TS, E)
        mean = jnp.mean(x, axis=-1, keepdims=True)
        xc = x - mean
        var = jnp.mean(xc * xc, axis=-1, keepdims=True)
        xn = xc * jax.lax.rsqrt(var + 1e-5)
        xn = xn * g_ref[0].astype(jnp.float32) + b_ref[0].astype(jnp.float32)
        xn_ref[...] = xn.astype(compute_dtype)

    # (TS, E) @ (E, d): bf16 operands, f32 accumulation on the MXU.
    y = jnp.dot(xn_ref[...], w_ref[0], preferred_element_type=jnp.float32)
    qkv_ref[0, 0] = y.astype(qkv_ref.dtype)


# --------------------------------------------------------------------------------------
# Kernel B: flash attention (online softmax over KV tiles) + residual
# --------------------------------------------------------------------------------------
def _flash_attn_kernel(x_ref, q_ref, k_ref, v_ref, o_ref, m_ref, l_ref, acc_ref,
                       *, scale, is_causal, tq, tk, compute_dtype):
    qi = pl.program_id(1)
    ki = pl.program_id(2)
    nk = pl.num_programs(2)

    @pl.when(ki == 0)
    def _():
        m_ref[...] = jnp.full(m_ref.shape, -1e30, jnp.float32)
        l_ref[...] = jnp.zeros(l_ref.shape, jnp.float32)
        acc_ref[...] = jnp.zeros(acc_ref.shape, jnp.float32)

    def tile_update():
        q = q_ref[0]                                           # (H, TQ, d) bf16
        k = k_ref[0]                                           # (H, TK, d) bf16
        v = v_ref[0]                                           # (H, TK, d) bf16
        # All heads in one batched contraction (no per-head transpose).
        s = jnp.einsum('hqd,hkd->hqk', q, k,
                       preferred_element_type=jnp.float32) * scale   # (H, TQ, TK) f32
        if is_causal:
            # Mask built once per tile, broadcast over heads (no per-head iota).
            row = qi * tq + jax.lax.broadcasted_iota(jnp.int32, (tq, tk), 0)
            col = ki * tk + jax.lax.broadcasted_iota(jnp.int32, (tq, tk), 1)
            s = jnp.where((col <= row)[None, :, :], s, -1e30)
        m_prev = m_ref[...]                                    # (H, TQ, 1)
        m_new = jnp.maximum(m_prev, jnp.max(s, axis=-1, keepdims=True))
        alpha = jnp.exp(m_prev - m_new)
        p = jnp.exp(s - m_new)                                 # (H, TQ, TK) f32
        l_ref[...] = alpha * l_ref[...] + jnp.sum(p, axis=-1, keepdims=True)
        acc_ref[...] = alpha * acc_ref[...] + jnp.einsum(
            'hqk,hkd->hqd', p.astype(compute_dtype), v,
            preferred_element_type=jnp.float32)
        m_ref[...] = m_new

    if is_causal:
        # Skip KV tiles entirely above the diagonal (compute only; DMA still issued).
        # TODO(synk): skipping the k/v DMA for fully-masked tiles needs a
        # data-dependent index_map (scalar-prefetched schedule); not done here.
        @pl.when(ki * tk <= qi * tq + (tq - 1))
        def _():
            tile_update()
    else:
        tile_update()

    @pl.when(ki == nk - 1)
    def _():
        inv_l = pl.reciprocal(l_ref[...], approx=True)         # EUP slot, ~free
        out = acc_ref[...] * inv_l                             # (H, TQ, d) f32
        # Single relayout per output tile: (H, TQ, d) -> (TQ, H*d) == (TQ, E).
        out = jnp.transpose(out, (1, 0, 2)).reshape(tq, -1)
        o_ref[0] = (out + x_ref[0].astype(jnp.float32)).astype(o_ref.dtype)


# --------------------------------------------------------------------------------------
# Host-side wrappers
# --------------------------------------------------------------------------------------
def prepare_qkv_weight(w_qkv, n_heads, dtype=jnp.bfloat16):
    """Rearrange torch-style (3E, E) nn.Linear weight into head-contiguous (3H, E, d).

    Done ONCE at parameter-load time, not per forward call."""
    three_e, e = w_qkv.shape
    assert three_e == 3 * e and e % n_heads == 0
    d = e // n_heads
    w = jnp.asarray(w_qkv).reshape(3 * n_heads, d, e)   # rows: [q h0..h, k h0..h, v h0..h]
    return jnp.transpose(w, (0, 2, 1)).astype(dtype)    # (3H, E, d): y = xn @ w[c]


def _pick_tile(n, target):
    if n <= target:
        return n
    for t in range(target, 7, -1):
        if n % t == 0 and t % 8 == 0:
            return t
    return n


def _vmem_limit(nbytes):
    return int(min(110 * 2**20, max(32 * 2**20, 2 * nbytes)))


def self_attention(x, w3, gamma, beta, *, n_heads, is_causal=False,
                   s_tile=256, q_tile=256, kv_tile=256,
                   compute_dtype=jnp.bfloat16):
    """x: (B, S, E) f32; w3: prepared (3H, E, d) weight (prepare_qkv_weight);
    gamma/beta: (E,) LayerNorm params."""
    B, S, E = x.shape
    H = n_heads
    assert E % H == 0
    d = E // H
    assert w3.shape == (3 * H, E, d)

    # Tile targets default to 256 (MXU-aligned for v6e/v7x).  On v7x (64 MiB VMEM)
    # use q_tile=kv_tile=128 at large E to roughly halve the per-step footprint.
    TS = _pick_tile(S, s_tile)
    TQ = _pick_tile(S, q_tile)
    TK = _pick_tile(S, kv_tile)

    g2 = jnp.asarray(gamma, jnp.float32).reshape(1, E)   # metadata-only reshape
    b2 = jnp.asarray(beta, jnp.float32).reshape(1, E)

    # ------------- Kernel A: LayerNorm + QKV projection -> (B, 3H, S, d) bf16 --------
    kern_a = functools.partial(_ln_qkv_kernel, compute_dtype=compute_dtype)
    est_a = 2 * (TS * E * 4 + E * d * 2 + TS * d * 2 + 2 * E * 4) + TS * E * 2
    qkv = pl.pallas_call(
        kern_a,
        out_shape=jax.ShapeDtypeStruct((B, 3 * H, S, d), compute_dtype),
        grid_spec=pltpu.PrefetchScalarGridSpec(
            num_scalar_prefetch=0,
            grid=(B, S // TS, 3 * H),
            in_specs=[
                pl.BlockSpec((1, TS, E), lambda b, s, c: (b, s, 0)),   # x (revisited over c)
                pl.BlockSpec((1, E, d), lambda b, s, c: (c, 0, 0)),    # streamed weight slice
                pl.BlockSpec((1, E), lambda b, s, c: (0, 0)),          # ln weight
                pl.BlockSpec((1, E), lambda b, s, c: (0, 0)),          # ln bias
            ],
            out_specs=pl.BlockSpec((1, 1, TS, d), lambda b, s, c: (b, c, s, 0)),
            scratch_shapes=[pltpu.VMEM((TS, E), compute_dtype)],       # cached LN(x) tile
        ),
        compiler_params=pltpu.CompilerParams(
            dimension_semantics=("parallel", "parallel", "arbitrary"),
            vmem_limit_bytes=_vmem_limit(est_a)),
        cost_estimate=pl.CostEstimate(
            flops=int(2 * B * S * E * 3 * E + 10 * B * S * E),
            transcendentals=int(B * S),
            bytes_accessed=int(4 * B * S * E + 2 * 3 * E * E + 2 * B * 3 * S * E)),
    )(x, w3, g2, b2)

    # ------------- Kernel B: flash attention + residual ------------------------------
    scale = 1.0 / math.sqrt(d)
    kern_b = functools.partial(_flash_attn_kernel, scale=scale, is_causal=is_causal,
                               tq=TQ, tk=TK, compute_dtype=compute_dtype)
    est_b = (2 * (H * TQ * d * 2 + 2 * H * TK * d * 2 + 2 * TQ * E * 4)
             + 2 * H * TQ * 128 * 4 + H * TQ * max(d, 128) * 4
             + 2 * H * TQ * max(TK, 128) * 4)
    out = pl.pallas_call(
        kern_b,
        out_shape=jax.ShapeDtypeStruct((B, S, E), x.dtype),
        grid_spec=pltpu.PrefetchScalarGridSpec(
            num_scalar_prefetch=0,
            grid=(B, S // TQ, S // TK),
            in_specs=[
                pl.BlockSpec((1, TQ, E), lambda b, q, k: (b, q, 0)),        # residual x
                pl.BlockSpec((1, H, TQ, d), lambda b, q, k: (b, 0, q, 0)),  # q (all heads)
                pl.BlockSpec((1, H, TK, d), lambda b, q, k: (b, 1, k, 0)),  # k (all heads)
                pl.BlockSpec((1, H, TK, d), lambda b, q, k: (b, 2, k, 0)),  # v (all heads)
            ],
            out_specs=pl.BlockSpec((1, TQ, E), lambda b, q, k: (b, q, 0)),  # lane-dense
            scratch_shapes=[
                pltpu.VMEM((H, TQ, 1), jnp.float32),   # running max m
                pltpu.VMEM((H, TQ, 1), jnp.float32),   # running denom l
                pltpu.VMEM((H, TQ, d), jnp.float32),   # output accumulator
            ],
        ),
        compiler_params=pltpu.CompilerParams(
            dimension_semantics=("parallel", "parallel", "arbitrary"),
            vmem_limit_bytes=_vmem_limit(est_b)),
        cost_estimate=pl.CostEstimate(
            flops=int(4 * B * H * S * S * d + 12 * B * H * S * S),
            transcendentals=int(B * H * S * S),
            bytes_accessed=int(2 * B * H * S * d * (1 + 2 * (S // TQ)) + 8 * B * S * E)),
    )(x, qkv, qkv, qkv)
    return out


# --------------------------------------------------------------------------------------
# Reference (mirrors the kernel's bf16 matmul / f32 accumulation rounding points)
# --------------------------------------------------------------------------------------
def _reference(x, w_qkv, gamma, beta, *, n_heads, is_causal=False,
               compute_dtype=jnp.bfloat16):
    B, S, E = x.shape
    d = E // n_heads
    xf = x.astype(jnp.float32)
    mean = jnp.mean(xf, axis=-1, keepdims=True)
    var = jnp.mean((xf - mean) ** 2, axis=-1, keepdims=True)
    xn = (xf - mean) * jax.lax.rsqrt(var + 1e-5) * gamma + beta
    qkv = jnp.dot(xn.astype(compute_dtype), w_qkv.T.astype(compute_dtype),
                  preferred_element_type=jnp.float32)              # (B, S, 3E)
    q, k, v = jnp.split(qkv, 3, axis=-1)

    def heads(t):
        return t.reshape(B, S, n_heads, d).transpose(0, 2, 1, 3).astype(compute_dtype)

    q, k, v = heads(q), heads(k), heads(v)
    s = jnp.einsum('bhqd,bhkd->bhqk', q, k,
                   preferred_element_type=jnp.float32) / math.sqrt(d)
    if is_causal:
        mask = jnp.tril(jnp.ones((S, S), dtype=bool))
        s = jnp.where(mask, s, -1e30)
    p = jax.nn.softmax(s, axis=-1)
    o = jnp.einsum('bhqk,bhkd->bhqd', p.astype(compute_dtype), v,
                   preferred_element_type=jnp.float32)
    o = o.transpose(0, 2, 1, 3).reshape(B, S, E)
    return o + xf


if __name__ == "__main__":
    # SMALL deterministic example: batch=2, seq=8, embed_dim=32, n_heads=4
    B, S, E, H = 2, 8, 32, 4
    key = jax.random.PRNGKey(0)
    kx, kw = jax.random.split(key)

    x = jax.random.normal(kx, (B, S, E), dtype=jnp.float32)
    # torch nn.Linear(embed_dim, 3*embed_dim, bias=None): weight shape (3E, E)
    w_qkv = jax.random.normal(kw, (3 * E, E), dtype=jnp.float32) * (1.0 / math.sqrt(E))
    gamma = jnp.ones((E,), dtype=jnp.float32)   # LayerNorm weight init = ones
    beta = jnp.zeros((E,), dtype=jnp.float32)   # LayerNorm bias init = zeros

    # Weight rearrangement done once at "load time" (not per forward call).
    w3 = prepare_qkv_weight(w_qkv, H)

    for causal in (False, True):
        out = self_attention(x, w3, gamma, beta, n_heads=H, is_causal=causal)
        out = jax.block_until_ready(out)
        ref = _reference(x, w_qkv, gamma, beta, n_heads=H, is_causal=causal)
        assert out.shape == (B, S, E)
        # bf16 matmul operands -> small numeric drift vs f32-style reference.
        assert jnp.allclose(out, ref, atol=3e-2, rtol=3e-2), f"mismatch (causal={causal})"

    print("KERNEL_OK")
</pallas_src>

<mosaic_0001>
module attributes {stable_mosaic.version = 11 : i64} {
  func.func @_ln_qkv_kernel(%arg0: i32, %arg1: i32, %arg2: i32, %arg3: memref<1x8x32xf32, #tpu.memory_space<vmem>>, %arg4: memref<1x32x8xbf16, #tpu.memory_space<vmem>>, %arg5: memref<1x32xf32, #tpu.memory_space<vmem>>, %arg6: memref<1x32xf32, #tpu.memory_space<vmem>>, %arg7: memref<1x1x8x8xbf16, #tpu.memory_space<vmem>>, %arg8: memref<8x32xbf16, #tpu.memory_space<vmem>>) attributes {dimension_semantics = [#tpu.dimension_semantics<parallel>, #tpu.dimension_semantics<parallel>, #tpu.dimension_semantics<arbitrary>], iteration_bounds = array<i64: 2, 1, 12>, scalar_prefetch = 0 : i64, scratch_operands = 1 : i64, tpu.core_type = #tpu.core_type<tc>, window_params = [{transform_indices = @transform_0, window_bounds = array<i64: 1, 8, 32>}, {transform_indices = @transform_1, window_bounds = array<i64: 1, 32, 8>}, {pipeline_mode = #tpu.pipeline_mode<synchronous>, transform_indices = @transform_2, window_bounds = array<i64: 1, 32>}, {pipeline_mode = #tpu.pipeline_mode<synchronous>, transform_indices = @transform_3, window_bounds = array<i64: 1, 32>}, {transform_indices = @transform_4, window_bounds = array<i64: 1, 1, 8, 8>}]} {
    %c0_i32 = arith.constant 0 : i32
    %0 = arith.cmpi eq, %arg2, %c0_i32 : i32
    %1 = arith.extui %0 : i1 to i32
    %c0_i32_0 = arith.constant 0 : i32
    %2 = arith.cmpi ne, %1, %c0_i32_0 : i32
    scf.if %2 {
      %c0_9 = arith.constant 0 : index
      %c0_10 = arith.constant 0 : index
      %c0_11 = arith.constant 0 : index
      %11 = vector.load %arg3[%c0_9, %c0_10, %c0_11] : memref<1x8x32xf32, #tpu.memory_space<vmem>>, vector<1x8x32xf32>
      %12 = vector.shape_cast %11 : vector<1x8x32xf32> to vector<8x32xf32>
      %cst_12 = arith.constant dense<0.000000e+00> : vector<8xf32>
      %13 = vector.multi_reduction <add>, %12, %cst_12 [1] : vector<8x32xf32> to vector<8xf32>
      %14 = vector.shape_cast %13 : vector<8xf32> to vector<8x1xf32>
      %cst_13 = arith.constant 3.200000e+01 : f32
      %15 = vector.broadcast %cst_13 : f32 to vector<8x1xf32>
      %16 = arith.divf %14, %15 : vector<8x1xf32>
      %17 = vector.broadcast %16 : vector<8x1xf32> to vector<8x32xf32>
      %18 = arith.subf %12, %17 : vector<8x32xf32>
      %19 = arith.mulf %18, %18 : vector<8x32xf32>
      %cst_14 = arith.constant dense<0.000000e+00> : vector<8xf32>
      %20 = vector.multi_reduction <add>, %19, %cst_14 [1] : vector<8x32xf32> to vector<8xf32>
      %21 = vector.shape_cast %20 : vector<8xf32> to vector<8x1xf32>
      %cst_15 = arith.constant 3.200000e+01 : f32
      %22 = vector.broadcast %cst_15 : f32 to vector<8x1xf32>
      %23 = arith.divf %21, %22 : vector<8x1xf32>
      %cst_16 = arith.constant 9.99999974E-6 : f32
      %24 = vector.broadcast %cst_16 : f32 to vector<8x1xf32>
      %25 = arith.addf %23, %24 : vector<8x1xf32>
      %26 = math.rsqrt %25 : vector<8x1xf32>
      %27 = vector.broadcast %26 : vector<8x1xf32> to vector<8x32xf32>
      %28 = arith.mulf %18, %27 : vector<8x32xf32>
      %c0_17 = arith.constant 0 : index
      %c0_18 = arith.constant 0 : index
      %29 = vector.load %arg5[%c0_17, %c0_18] : memref<1x32xf32, #tpu.memory_space<vmem>>, vector<1x32xf32>
      %30 = vector.shape_cast %29 : vector<1x32xf32> to vector<32xf32>
      %31 = vector.shape_cast %30 : vector<32xf32> to vector<1x32xf32>
      %32 = vector.broadcast %31 : vector<1x32xf32> to vector<8x32xf32>
      %33 = arith.mulf %28, %32 : vector<8x32xf32>
      %c0_19 = arith.constant 0 : index
      %c0_20 = arith.constant 0 : index
      %34 = vector.load %arg6[%c0_19, %c0_20] : memref<1x32xf32, #tpu.memory_space<vmem>>, vector<1x32xf32>
      %35 = vector.shape_cast %34 : vector<1x32xf32> to vector<32xf32>
      %36 = vector.shape_cast %35 : vector<32xf32> to vector<1x32xf32>
      %37 = vector.broadcast %36 : vector<1x32xf32> to vector<8x32xf32>
      %38 = arith.addf %33, %37 : vector<8x32xf32>
      %39 = arith.truncf %38 : vector<8x32xf32> to vector<8x32xbf16>
      %c0_21 = arith.constant 0 : index
      %c0_22 = arith.constant 0 : index
      %40 = vector.load %arg8[%c0_21, %c0_22] : memref<8x32xbf16, #tpu.memory_space<vmem>>, vector<8x32xbf16>
      tpu.vector_store %arg8[%c0_21, %c0_22], %39 {strides = array<i32>} : memref<8x32xbf16, #tpu.memory_space<vmem>>, vector<8x32xbf16>,
    } else {
    }
    %c0 = arith.constant 0 : index
    %c0_1 = arith.constant 0 : index
    %3 = vector.load %arg8[%c0, %c0_1] : memref<8x32xbf16, #tpu.memory_space<vmem>>, vector<8x32xbf16>
    %c0_2 = arith.constant 0 : index
    %c0_3 = arith.constant 0 : index
    %c0_4 = arith.constant 0 : index
    %4 = vector.load %arg4[%c0_2, %c0_3, %c0_4] : memref<1x32x8xbf16, #tpu.memory_space<vmem>>, vector<1x32x8xbf16>
    %5 = vector.shape_cast %4 : vector<1x32x8xbf16> to vector<32x8xbf16>
    %cst = arith.constant dense<0.000000e+00> : vector<8x8xf32>
    %6 = tpu.matmul %3, %5, %cst {dimension_numbers = #tpu.dot_dimension_numbers<[1], [0], [0], [1], [0, 0, 1, 1], [], []>} : vector<8x32xbf16>, vector<32x8xbf16>, vector<8x8xf32> -> vector<8x8xf32>
    %7 = arith.truncf %6 : vector<8x8xf32> to vector<8x8xbf16>
    %c0_5 = arith.constant 0 : index
    %c0_6 = arith.constant 0 : index
    %c0_7 = arith.constant 0 : index
    %c0_8 = arith.constant 0 : index
    %8 = vector.load %arg7[%c0_5, %c0_6, %c0_7, %c0_8] : memref<1x1x8x8xbf16, #tpu.memory_space<vmem>>, vector<1x1x8x8xbf16>
    %9 = vector.shape_cast %8 : vector<1x1x8x8xbf16> to vector<8x8xbf16>
    %10 = vector.shape_cast %7 : vector<8x8xbf16> to vector<1x1x8x8xbf16>
    tpu.vector_store %arg7[%c0_5, %c0_6, %c0_7, %c0_8], %10 {strides = array<i32>} : memref<1x1x8x8xbf16, #tpu.memory_space<vmem>>, vector<1x1x8x8xbf16>,
    return
  }
  func.func @transform_0(%arg0: i32, %arg1: i32, %arg2: i32) -> (i32, i32, i32) {
    %c0_i32 = arith.constant 0 : i32
    %c0_i32_0 = arith.constant 0 : i32
    return %arg0, %arg1, %c0_i32 : i32, i32, i32
  }
  func.func @transform_1(%arg0: i32, %arg1: i32, %arg2: i32) -> (i32, i32, i32) {
    %c0_i32 = arith.constant 0 : i32
    %c0_i32_0 = arith.constant 0 : i32
    %c0_i32_1 = arith.constant 0 : i32
    return %arg2, %c0_i32, %c0_i32_0 : i32, i32, i32
  }
  func.func @transform_2(%arg0: i32, %arg1: i32, %arg2: i32) -> (i32, i32) {
    %c0_i32 = arith.constant 0 : i32
    %c0_i32_0 = arith.constant 0 : i32
    %c0_i32_1 = arith.constant 0 : i32
    return %c0_i32, %c0_i32_0 : i32, i32
  }
  func.func @transform_3(%arg0: i32, %arg1: i32, %arg2: i32) -> (i32, i32) {
    %c0_i32 = arith.constant 0 : i32
    %c0_i32_0 = arith.constant 0 : i32
    %c0_i32_1 = arith.constant 0 : i32
    return %c0_i32, %c0_i32_0 : i32, i32
  }
  func.func @transform_4(%arg0: i32, %arg1: i32, %arg2: i32) -> (i32, i32, i32, i32) {
    %c0_i32 = arith.constant 0 : i32
    %c0_i32_0 = arith.constant 0 : i32
    return %arg0, %arg2, %arg1, %c0_i32 : i32, i32, i32, i32
  }
}

</mosaic_0001>

<bundles_post_ra>
// kernel: tpu_custom_call.1
= control target key start
LH: loop header
LB: loop body
LE: loop exit
PB: predicated region body
PF: predicated region fallthrough
CT: control target
= control target key end

     0   :  { %s616_s15 = smov 0   ;;  %s618_s16 = smov 0   ;;  %s683_s0 = inlined_call_operand.vmem [shape: f32[2,8,32], index: 0, kind: input, shape index: {}]   ;;  %s684_s1 = inlined_call_operand.vmem [shape: bf16[12,32,8], index: 1, kind: input, shape index: {}]   ;;  %s685_s2 = inlined_call_operand.vmem [shape: f32[1,32], index: 2, kind: input, shape index: {}]   ;;  %s686_s3 = inlined_call_operand.vmem [shape: f32[1,32], index: 3, kind: input, shape index: {}]   ;;  %s687_s4 = inlined_call_operand.vmem [shape: bf16[2,12,8,8], index: 4, kind: output, shape index: {}]  }
   0x1   :  { %s620_s17 = smov 0   ;;  %s622_s18 = smov 0  }
   0x2   :  { %s624_s19 = smov 0  }
   0x3 LB: > { %s26_s20 = sadd.s32 1, %s579_s17  ;;  %s33_s21 = sadd.s32 1, %s583_s18  ;;  %s587_s19 = sphi %s624_s19, %s14_s19   ;;  %s583_s18 = sphi %s622_s18, %s691_s18   ;;  %s579_s17 = sphi %s620_s17, %s690_s17   ;;  %s575_s16 = sphi %s618_s16, %s689_s16   ;;  %s571_s15 = sphi %s616_s15, %s688_s15  }
   0x4   : > { %p27_p0 = scmp.ge.s32.totalorder %s26_s20, 12  ;;  %p477_p1 = scmp.ge.s32.totalorder %s587_s19, 1 }
   0x5   : > { %p199_p2 = scmp.lt.s32.totalorder %s587_s19, 25 }
   0x6   : > { %s693_s20 = smov (%p27_p0, %s26_s20), 0  ;;  %s695_s21 = smov (!%p27_p0, %s33_s21), %s583_s18 }
   0x7   : > { %p200_p3 = pnand %p477_p1, %p199_p2  ;;  %p35_p4 = scmp.ge.s32.totalorder %s695_s21, 2 }
   0x8   : > { %p238_p5 = scmp.lt.s32.totalorder (!%p200_p3), %s575_s16, 1  ;;  %p245_p6 = scmp.lt.s32.totalorder (!%p200_p3), %s571_s15, 11 }
   0x9   : > { %s697_s21 = smov (%p35_p4, %s695_s21), 0  ;;  %203 = sbr.rel (%p200_p3) target bundleno = 561 (0x231), region = 36 }
   0xa   : > { %p482_p7 = scmp.ne.s32.totalorder (!%p200_p3), %s571_s15, 0 }
  0x10   : > { %s699_s16 = smov (!%p238_p5, %s575_s16), 1  ;;  %265 = sbr.rel (%p482_p7) target bundleno = 337 (0x151), region = 40 }
  0x11   : > { %s246_s22 = scalar_select %p245_p6, %s571_s15, 11 }
  0x12   : > { %s478_s23 = sshll.u32 %s699_s16, 3  ;;  %s502_s24 = smul.u32 12, %s699_s16  ;;  %vm267_vm0 = vcmask (!%p482_p7), 261120   ;;  %v483_v11 = vld [vmem:[%s685_s2] ss:$0 sm:$0xff] (!%p482_p7)  ;;  %vm299_vm1 = vcmask (!%p482_p7), 257024  }
  0x13   : > { %s244_s27 = scalar_lea.vmem %s683_s0, %s478_s23  ;;  %s490_s28 = sshll.u32 %s246_s22, 4  ;;  %v484_v13 = vld [vmem:[%s686_s3] ss:$0 sm:$0xff] (!%p482_p7) }
  0x14   : > { %s652_s5 = scalar_lea.vmem %s684_s1, %s490_s28  ;;  %s258_s6 = sadd.s32 %s502_s24, %s246_s22  ;;  %v266_v0 = vld [vmem:[%s244_s27] sm:$0xff] (!%p482_p7) }
  0x15   : > { %s481_s7 = sshll.u32 %s258_s6, 2  ;;  %v268_v1 = vsel (!%p482_p7), %vm267_vm0, %v266_v0, 0.0 }
  0x16   : > { %s657_s10 = scalar_lea.vmem %s687_s4, %s481_s7  ;;  %269 = vadd.xlane.f32.xlu0 (!%p482_p7), %v268_v1 }
  0xa3   : > { %v270_v2 = vpop.xlane.xlu0 %269 }
  0xa4   : > { %v272_v3 = vmul.f32 0.03125, %v270_v2 }
  0xa6   : > { %v273_v4 = vsub.f32 %v266_v0, %v272_v3 }
  0xa8   : > { %v274_v5 = vmul.f32 %v273_v4, %v273_v4 }
  0xaa   : > { %v275_v6 = vsel %vm267_vm0, %v274_v5, 0.0 }
  0xab   : > { %276 = vadd.xlane.f32.xlu0 %v275_v6 }
 0x138   : > { %v277_v7 = vpop.xlane.xlu0 %276 }
 0x139   : > { %v278_v8 = vmul.f32 0.03125, %v277_v7 }
 0x13b   : > { %v279_v9 = vadd.f32 1e-05, %v278_v8 }
 0x13d   : > { %545 = vrsqrt.f32 %v279_v9 }
 0x147   : > { %v546_v10 = vpop.eup %545 }
 0x148   : > { %v281_v12 = vmul.f32 %v546_v10, %v273_v4 }
 0x14a   : > { %v289_v14 = vmul.f32 %v483_v11, %v281_v12 }
 0x14c   : > { %v297_v15 = vadd.f32 %v484_v13, %v289_v14 }
 0x14e   : > { %v298_v16 = vpack.c.bf16 %v297_v15, %v297_v15 }
 0x150   : > { %300 = vst.msk [vmem:[#allocation2] sm:$0xf] %vm299_vm1, %v298_v16 }
 0x151 PF: > { %v547_v17 = vld [vmem:[%s652_s5] sm:$0xff]   ;;  %v589_v18 = vmov 0.0   ;;  %v548_v19 = vld [vmem:[%s652_s5 + $0x8] sm:$0xff]   ;;  %vm590_vm2 = vmmov 0   ;;  %vm318_vm3 = vcmask 261120   ;;  %vm363_vm4 = vcmask 60416  }
 0x152   : > { %494 = vmatprep.subr.bf16.mxu0 %v589_v18  ;;  %498 = vmatprep.mubr.msk.bf16.mxu0 %vm590_vm2, %v589_v18 }
 0x153   : > { %495 = vmatpush3.bf16.msra.mxu0 %v547_v17 }
 0x154   : > { %496 = vmatprep.subr.bf16.mxu0 %v589_v18 }
 0x157   : > { %497 = vmatpush3.bf16.msra.mxu0 %v548_v19  ;;  %v301_v20 = vld [vmem:[#allocation2] sm:$0xf] }
 0x15a   : > { %499 = vmatmul.mubr.msk.bf16.vlgmr.msra.gmra.mrb[0].mxu0 %vm318_vm3, %v301_v20 }
 0x22d   : > { %v356_v21 = vpop.f32.mrb[0].mxu0 }
 0x22e   : > { %v362_v22 = vpack.c.bf16 %v356_v21, %v356_v21  ;;  %v500_v23 = vpop.f32.mrb[1].mxu0 }
 0x22f   : > { %v359_v24 = vpop.f32.mrb[2].mxu0 }
 0x230   : > { %364 = vst.msk [vmem:[%s657_s10] sm:$0xf] %vm363_vm4, %v362_v22  ;;  %v501_v25 = vpop.f32.mrb[3].mxu0 }
 0x231 PF: > { %s14_s19 = sadd.s32 1, %s587_s19   ;;  %s688_s15 = smov %s579_s17 }
 0x232   : > { %p11_p8 = scmp.ge.s32.totalorder %s14_s19, 26   ;;  %s689_s16 = smov %s583_s18 }
 0x233   : > { %s690_s17 = smov %s693_s20  ;;  %s691_s18 = smov %s697_s21 }
 0x234   :  { %13 = sbr.rel (!%p11_p8) target bundleno = 3 (0x3), region = 73 }

</bundles_post_ra>
